<compile_context>
chip_gen: v6e
topology: v6e:2x2x1
jax: 0.10.0
libtpu: 0.0.40
codegen_flags: <defaults>
</compile_context>

<pallas_src>
import jax
import jax.numpy as jnp
from jax import lax
from jax.experimental import pallas as pl
from jax.experimental.pallas import tpu as pltpu


def _round_up(x, m):
    return (x + m - 1) // m * m


# ----------------------------------------------------------------------------
# Kernel 1: full-vocabulary logits   out = x @ emb.T + bias
# ----------------------------------------------------------------------------
def _full_logits_kernel(x_ref, emb_ref, bias_ref, out_ref):
    # x_ref    : (tb, D)   batch tile
    # emb_ref  : (tv, D)   vocab tile of the (V, D) table (no HBM transpose)
    # bias_ref : (1, tv)
    # out_ref  : (tb, tv)  lane-dense output slab
    acc = lax.dot_general(
        x_ref[...], emb_ref[...],
        dimension_numbers=(((1,), (1,)), ((), ())),   # contract D with D (x @ emb.T)
        preferred_element_type=jnp.float32)           # MXU, f32 accumulation
    out_ref[...] = acc + bias_ref[...]


def full_vocab_logits(x, emb_weight, bias, *, tb=256, tv=512,
                      compute_dtype=None,
                      vmem_limit_bytes=32 * 1024 * 1024):
    """logits = x @ emb_weight.T + bias, tiled (vocab outer, batch inner)."""
    B, D = x.shape
    V = emb_weight.shape[0]

    # Batch tile: clamp to an 8-aligned size and pad x (cheap, B*D only).
    tb = min(tb, _round_up(B, 8))
    B_p = _round_up(B, tb)

    # Vocab tile: never rewrite the big table.  Single tile if V <= tv, otherwise
    # tv (multiple of 128); a ragged last tile is handled by Pallas OOB masking
    # (garbage rows only feed output columns >= V, which we slice off).
    if V <= tv:
        tv_eff, V_pad = V, V
    else:
        tv_eff = tv
        V_pad = _round_up(V, tv_eff)
    nv = V_pad // tv_eff
    nb = B_p // tb

    emb = emb_weight
    if compute_dtype is not None:
        # Optional bf16 weights/activations (f32 accumulation + f32 bias kept).
        # TODO(synk): persist the low-precision table across calls instead of
        # casting per call.
        x = x.astype(compute_dtype)
        emb = emb.astype(compute_dtype)

    x_p = jnp.pad(x, ((0, B_p - B), (0, 0)))
    bias_p = bias.astype(jnp.float32)
    if V_pad != V:
        bias_p = jnp.pad(bias_p, ((0, 0), (0, V_pad - V)))   # (1, V) only: tiny

    # TODO(synk): for very large d_model (D >~ 8K at f32) add a K grid axis with a
    # VMEM accumulator so the (tv, D) tile stays inside the v7x 64 MiB VMEM budget.
    out = pl.pallas_call(
        _full_logits_kernel,
        out_shape=jax.ShapeDtypeStruct((B_p, V_pad), jnp.float32),
        grid_spec=pltpu.PrefetchScalarGridSpec(
            num_scalar_prefetch=0,
            grid=(nv, nb),                                   # vocab OUTER
            in_specs=[
                pl.BlockSpec((tb, D), lambda v, b: (b, 0)),      # x (re-streamed, small)
                pl.BlockSpec((tv_eff, D), lambda v, b: (v, 0)),  # table streamed once
                pl.BlockSpec((1, tv_eff), lambda v, b: (0, v)),
            ],
            out_specs=pl.BlockSpec((tb, tv_eff), lambda v, b: (b, v)),
        ),
        compiler_params=pltpu.CompilerParams(
            dimension_semantics=("parallel", "parallel"),
            vmem_limit_bytes=vmem_limit_bytes,
        ),
    )(x_p, emb, bias_p)
    return out[:B, :V]


# ----------------------------------------------------------------------------
# Kernel 2a: candidate logits, small/medium vocab (table resident in VMEM)
# ----------------------------------------------------------------------------
def _cand_vmem_kernel(cand_ref, x_ref, biasc_ref, emb_ref, out_ref, emb_scr):
    # cand_ref  : (B_p*C,) int32 in SMEM (scalar prefetch, flattened 1-D)
    # x_ref     : (tb, D)  batch tile
    # biasc_ref : (tb, C)  pre-gathered candidate biases (tiny wrapper glue)
    # emb_ref   : (V, D)   full embedding table, resident in VMEM
    # out_ref   : (tb, C)
    # emb_scr   : (tb, C, D) f32 gather destination
    i = pl.program_id(0)
    tb, C, D = emb_scr.shape
    base = i * (tb * C)

    # In-VMEM gather: dynamic-index row copies (no DMA descriptors / semaphores).
    @pl.loop(0, tb)
    def _(b):
        @pl.loop(0, C)
        def _(c):
            row = cand_ref[base + b * C + c]
            emb_scr[b, pl.ds(c, 1), :] = (
                emb_ref[pl.ds(row, 1), :].astype(jnp.float32))

    x = x_ref[...].astype(jnp.float32)                      # (tb, D)
    embc = emb_scr[...]                                     # (tb, C, D)
    # q=1 per row -> MXU would be <1% utilized; use VPU multiply + lane reduce.
    s = jnp.sum(x[:, None, :] * embc, axis=-1)              # (tb, C)
    # TODO(synk): for large C, pad the output to a 128-lane multiple for an
    # unmasked store; at small C the masked vst is negligible vs. the gather.
    out_ref[...] = s + biasc_ref[...]


# ----------------------------------------------------------------------------
# Kernel 2b: candidate logits, large vocab (table stays in HBM, DMA gather)
# ----------------------------------------------------------------------------
def _cand_dma_kernel(cand_ref, x_ref, biasc_ref, emb_hbm, out_ref,
                     emb_scr, sem):
    # cand_ref  : (B_p*C,) int32 in SMEM (flattened)
    # emb_hbm   : (V, D) full table left in HBM (pl.ANY)
    # emb_scr   : (2, C, D) per-batch-row double buffer
    # sem       : DMA semaphores, shape (2,) (one per buffer slot)
    i = pl.program_id(0)
    tb = x_ref.shape[0]
    _, C, D = emb_scr.shape
    base = i * (tb * C)

    def issue(b, slot):
        @pl.loop(0, C)
        def _(c):
            row = cand_ref[base + b * C + c]
            pltpu.make_async_copy(emb_hbm.at[pl.ds(row, 1), :],
                                  emb_scr.at[slot, pl.ds(c, 1), :],
                                  sem.at[slot]).start()

    def drain(b, slot):
        # Wait on the SAME descriptors that were started (matching src/dst).
        @pl.loop(0, C)
        def _(c):
            row = cand_ref[base + b * C + c]
            pltpu.make_async_copy(emb_hbm.at[pl.ds(row, 1), :],
                                  emb_scr.at[slot, pl.ds(c, 1), :],
                                  sem.at[slot]).wait()

    issue(0, 0)                                             # prime slot 0

    @pl.loop(0, tb)
    def _(b):
        slot = b % 2

        @pl.when(b + 1 < tb)                                # prefetch next row's
        def _():                                            # gathers (overlap)
            issue(b + 1, 1 - slot)

        drain(b, slot)
        xb = x_ref[pl.ds(b, 1), :].astype(jnp.float32)      # (1, D)
        rows = emb_scr[slot].astype(jnp.float32)            # (C, D)
        s = jnp.sum(xb * rows, axis=-1)[None, :]            # (1, C) VPU + XLU
        out_ref[pl.ds(b, 1), :] = s + biasc_ref[pl.ds(b, 1), :]


def candidate_logits(x, emb_weight, bias, candidates, *, tb=64,
                     vmem_table_bytes=4 * 1024 * 1024):
    B, D = x.shape
    V = emb_weight.shape[0]
    _, C = candidates.shape

    tb = min(tb, _round_up(B, 8))
    B_p = _round_up(B, tb)

    x_p = jnp.pad(x, ((0, B_p - B), (0, 0)))
    cand_p = jnp.pad(candidates, ((0, B_p - B), (0, 0))).astype(jnp.int32)
    cand_flat = cand_p.reshape(-1)                          # 1-D -> cheap SMEM pad
    # Bias gather is only (B, C) scalars -> cheap wrapper glue.
    bias_c = jnp.take(bias.reshape(-1).astype(jnp.float32), cand_p, axis=0)

    table_bytes = V * D * emb_weight.dtype.itemsize
    if table_bytes <= vmem_table_bytes:
        # Small-vocab fast path: whole table in VMEM, no per-row DMAs.
        kernel = _cand_vmem_kernel
        emb_spec = pl.BlockSpec((V, D), lambda i, cand: (0, 0))
        scratch = [pltpu.VMEM((tb, C, D), jnp.float32)]
    else:
        # Large-vocab path: HBM table + double-buffered, row-chunked DMA gather.
        # TODO(synk): budget tb*C*D against VMEM when scaling tb/C up.
        kernel = _cand_dma_kernel
        emb_spec = pl.BlockSpec(memory_space=pl.ANY)
        scratch = [pltpu.VMEM((2, C, D), emb_weight.dtype),
                   pltpu.SemaphoreType.DMA((2,))]

    out = pl.pallas_call(
        kernel,
        out_shape=jax.ShapeDtypeStruct((B_p, C), jnp.float32),
        grid_spec=pltpu.PrefetchScalarGridSpec(
            num_scalar_prefetch=1,                          # candidates -> SMEM
            grid=(B_p // tb,),
            in_specs=[
                pl.BlockSpec((tb, D), lambda i, cand: (i, 0)),
                pl.BlockSpec((tb, C), lambda i, cand: (i, 0)),
                emb_spec,
            ],
            out_specs=pl.BlockSpec((tb, C), lambda i, cand: (i, 0)),
            scratch_shapes=scratch,
        ),
        compiler_params=pltpu.CompilerParams(
            dimension_semantics=("parallel",),
            vmem_limit_bytes=32 * 1024 * 1024,
        ),
    )(cand_flat, x_p, bias_c, emb_weight)
    return out[:B]


# ----------------------------------------------------------------------------
# Module-equivalent wrapper
# ----------------------------------------------------------------------------
def dot_product_prediction_head(x, emb_weight, bias, candidates=None, *,
                                compute_dtype=None):
    if candidates is not None:
        return candidate_logits(x, emb_weight, bias, candidates)
    return full_vocab_logits(x, emb_weight, bias, compute_dtype=compute_dtype)


if __name__ == "__main__":
    # Small shapes consistent with the module:
    #   d_model=32, num_items=127 -> vocab_size=128, batch=8, num candidates=8
    B, D, NUM_ITEMS, C = 8, 32, 127, 8
    V = NUM_ITEMS + 1

    key = jax.random.PRNGKey(0)
    kx, ke, kb, kc = jax.random.split(key, 4)

    x = jax.random.normal(kx, (B, D), dtype=jnp.float32)
    emb_weight = jax.random.normal(ke, (V, D), dtype=jnp.float32) * 0.02
    bias = jax.random.normal(kb, (1, V), dtype=jnp.float32) * 0.1
    candidates = jax.random.randint(kc, (B, C), 0, V, dtype=jnp.int32)

    # Branch 1: candidates=None  -> (B, V)
    logits_full = jax.block_until_ready(
        dot_product_prediction_head(x, emb_weight, bias))
    ref_full = x @ emb_weight.T + bias
    assert logits_full.shape == (B, V)
    assert jnp.allclose(logits_full, ref_full, atol=1e-5, rtol=1e-5)

    # Branch 2: with candidates  -> (B, C)
    logits_cand = jax.block_until_ready(
        dot_product_prediction_head(x, emb_weight, bias, candidates))
    ref_cand = jnp.sum(x[:, None, :] * emb_weight[candidates], axis=-1) \
        + bias[0][candidates]
    assert logits_cand.shape == (B, C)
    assert jnp.allclose(logits_cand, ref_cand, atol=1e-5, rtol=1e-5)

    print("KERNEL_OK")
</pallas_src>

<mosaic_0001>
module attributes {stable_mosaic.version = 11 : i64} {
  func.func @_full_logits_kernel(%arg0: i32, %arg1: i32, %arg2: memref<8x32xf32, #tpu.memory_space<vmem>>, %arg3: memref<128x32xf32, #tpu.memory_space<vmem>>, %arg4: memref<1x128xf32, #tpu.memory_space<vmem>>, %arg5: memref<8x128xf32, #tpu.memory_space<vmem>>) attributes {dimension_semantics = [#tpu.dimension_semantics<parallel>, #tpu.dimension_semantics<parallel>], iteration_bounds = array<i64: 1, 1>, scalar_prefetch = 0 : i64, scratch_operands = 0 : i64, tpu.core_type = #tpu.core_type<tc>, window_params = [{transform_indices = @transform_0, window_bounds = array<i64: 8, 32>}, {transform_indices = @transform_1, window_bounds = array<i64: 128, 32>}, {transform_indices = @transform_2, window_bounds = array<i64: 1, 128>}, {transform_indices = @transform_3, window_bounds = array<i64: 8, 128>}]} {
    %c0 = arith.constant 0 : index
    %c0_0 = arith.constant 0 : index
    %0 = vector.load %arg2[%c0, %c0_0] : memref<8x32xf32, #tpu.memory_space<vmem>>, vector<8x32xf32>
    %c0_1 = arith.constant 0 : index
    %c0_2 = arith.constant 0 : index
    %1 = vector.load %arg3[%c0_1, %c0_2] : memref<128x32xf32, #tpu.memory_space<vmem>>, vector<128x32xf32>
    %cst = arith.constant dense<0.000000e+00> : vector<8x128xf32>
    %2 = tpu.matmul %0, %1, %cst {dimension_numbers = #tpu.dot_dimension_numbers<[1], [1], [0], [0], [0, 0, 1, 0], [], []>} : vector<8x32xf32>, vector<128x32xf32>, vector<8x128xf32> -> vector<8x128xf32>
    %c0_3 = arith.constant 0 : index
    %c0_4 = arith.constant 0 : index
    %3 = vector.load %arg4[%c0_3, %c0_4] : memref<1x128xf32, #tpu.memory_space<vmem>>, vector<1x128xf32>
    %4 = vector.broadcast %3 : vector<1x128xf32> to vector<8x128xf32>
    %5 = arith.addf %2, %4 : vector<8x128xf32>
    %c0_5 = arith.constant 0 : index
    %c0_6 = arith.constant 0 : index
    %6 = vector.load %arg5[%c0_5, %c0_6] : memref<8x128xf32, #tpu.memory_space<vmem>>, vector<8x128xf32>
    tpu.vector_store %arg5[%c0_5, %c0_6], %5 {strides = array<i32>} : memref<8x128xf32, #tpu.memory_space<vmem>>, vector<8x128xf32>,
    return
  }
  func.func @transform_0(%arg0: i32, %arg1: i32) -> (i32, i32) {
    %c0_i32 = arith.constant 0 : i32
    %c0_i32_0 = arith.constant 0 : i32
    return %arg1, %c0_i32 : i32, i32
  }
  func.func @transform_1(%arg0: i32, %arg1: i32) -> (i32, i32) {
    %c0_i32 = arith.constant 0 : i32
    %c0_i32_0 = arith.constant 0 : i32
    return %arg0, %c0_i32 : i32, i32
  }
  func.func @transform_2(%arg0: i32, %arg1: i32) -> (i32, i32) {
    %c0_i32 = arith.constant 0 : i32
    %c0_i32_0 = arith.constant 0 : i32
    return %c0_i32, %arg0 : i32, i32
  }
  func.func @transform_3(%arg0: i32, %arg1: i32) -> (i32, i32) {
    %c0_i32 = arith.constant 0 : i32
    return %arg1, %arg0 : i32, i32
  }
}

</mosaic_0001>

<bundles_post_ra>
// kernel: tpu_custom_call.1
= control target key start
LH: loop header
LB: loop body
LE: loop exit
PB: predicated region body
PF: predicated region fallthrough
CT: control target
= control target key end

     0   :  { %vm39_vm0 = vcmask 261120   ;;  %v271_v1 = vmov 0.0   ;;  %vm272_vm1 = vmmov 0   ;;  %s368_s0 = inlined_call_operand.vmem [shape: f32[8,32], index: 0, kind: input, shape index: {}]   ;;  %s369_s1 = inlined_call_operand.vmem [shape: f32[128,32], index: 1, kind: input, shape index: {}]   ;;  %s370_s2 = inlined_call_operand.vmem [shape: f32[1,128], index: 2, kind: input, shape index: {}]   ;;  %s371_s3 = inlined_call_operand.hbm [shape: f32[8,128], index: 3, kind: output, shape index: {}]  }
   0x1   :  { %v31_v0 = vld [vmem:[%s369_s1 + $0x78] sm:$0xff]  ;;  %211 = vmatprep.subr.mxu0 %v271_v1  ;;  %243 = vmatprep.mubr.msk.f32.mxu0 %vm272_vm1, %v271_v1  ;;  %v30_v2 = vld [vmem:[%s369_s1 + $0x70] sm:$0xff] }
   0x2   :  { %212 = vmatpush3.xpose.msk.msra.mxu0 %vm39_vm0, %v31_v0 }
   0x3   :  { %213 = vmatprep.subr.mxu0 %v271_v1 }
   0x6   :  { %214 = vmatpush3.xpose.msk.msra.mxu0 %vm39_vm0, %v30_v2 }
   0x7   :  { %8 = vsyncpa [#allocation3], 0  ;;  %215 = vmatprep.subr.mxu0 %v271_v1  ;;  %v29_v3 = vld [vmem:[%s369_s1 + $0x68] sm:$0xff]  ;;  %v28_v4 = vld [vmem:[%s369_s1 + $0x60] sm:$0xff]  ;;  %s273_s21 = smov [#allocation2]  }
   0x8   :  { %v27_v5 = vld [vmem:[%s369_s1 + $0x58] sm:$0xff]  ;;  %v26_v6 = vld [vmem:[%s369_s1 + $0x50] sm:$0xff]  ;;  %v25_v7 = vld [vmem:[%s369_s1 + $0x48] sm:$0xff]  ;;  %s168_s22 = sshll.u32 %s273_s21, 4  ;;  %s169_s22 = int_to_ptr.vmem [resolvable:$true] %s168_s22 }
   0x9   :  { %v24_v8 = vld [vmem:[%s369_s1 + $0x40] sm:$0xff]  ;;  %v23_v9 = vld [vmem:[%s369_s1 + $0x38] sm:$0xff]  ;;  %v22_v10 = vld [vmem:[%s369_s1 + $0x30] sm:$0xff]  ;;  %p254_p1 = scmp.lt.s32.totalorder %s169_s22, %s169_s22 }
   0xa   :  { %216 = vmatpush3.xpose.msk.msra.mxu0 %vm39_vm0, %v29_v3  ;;  %v21_v11 = vld [vmem:[%s369_s1 + $0x28] sm:$0xff]  ;;  %v20_v12 = vld [vmem:[%s369_s1 + $0x20] sm:$0xff]  ;;  %v19_v13 = vld [vmem:[%s369_s1 + $0x18] sm:$0xff] }
   0xb   :  { %217 = vmatprep.subr.mxu0 %v271_v1  ;;  %v18_v14 = vld [vmem:[%s369_s1 + $0x10] sm:$0xff]  ;;  %v17_v15 = vld [vmem:[%s369_s1 + $0x8] sm:$0xff]  ;;  %v16_v16 = vld [vmem:[%s369_s1] sm:$0xff]  ;;  %s249_s1 = scalar_lea.vmem %s169_s22, 128 }
   0xc   :  { %v15_v17 = vld [vmem:[%s368_s0] sm:$0xff]  ;;  %p250_p0 = scmp.ne.s32.totalorder %s169_s22, %s249_s1  ;;  %p255_p2 = scmp.lt.s32.totalorder %s249_s1, %s249_s1 }
   0xd   :  { %v176_v18 = vld [vmem:[%s370_s2] ss:$0 sm:$0xff] }
   0xe   :  { %218 = vmatpush3.xpose.msk.msra.mxu0 %vm39_vm0, %v28_v4  ;;  %p256_p3 = por %p255_p2, %p254_p1 }
   0xf   :  { %219 = vmatprep.subr.mxu0 %v271_v1 }
  0x10   :  { %p257_p4 = pnand %p256_p3, %p250_p0 }
  0x12   :  { %220 = vmatpush3.xpose.msk.msra.mxu0 %vm39_vm0, %v27_v5 }
  0x13   :  { %221 = vmatprep.subr.mxu0 %v271_v1 }
  0x16   :  { %222 = vmatpush3.xpose.msk.msra.mxu0 %vm39_vm0, %v26_v6 }
  0x17   :  { %223 = vmatprep.subr.mxu0 %v271_v1 }
  0x1a   :  { %224 = vmatpush3.xpose.msk.msra.mxu0 %vm39_vm0, %v25_v7 }
  0x1b   :  { %225 = vmatprep.subr.mxu0 %v271_v1 }
  0x1e   :  { %226 = vmatpush3.xpose.msk.msra.mxu0 %vm39_vm0, %v24_v8 }
  0x1f   :  { %227 = vmatprep.subr.mxu0 %v271_v1 }
  0x22   :  { %228 = vmatpush3.xpose.msk.msra.mxu0 %vm39_vm0, %v23_v9 }
  0x23   :  { %229 = vmatprep.subr.mxu0 %v271_v1 }
  0x26   :  { %230 = vmatpush3.xpose.msk.msra.mxu0 %vm39_vm0, %v22_v10 }
  0x27   :  { %231 = vmatprep.subr.mxu0 %v271_v1 }
  0x2a   :  { %232 = vmatpush3.xpose.msk.msra.mxu0 %vm39_vm0, %v21_v11 }
  0x2b   :  { %233 = vmatprep.subr.mxu0 %v271_v1 }
  0x2e   :  { %234 = vmatpush3.xpose.msk.msra.mxu0 %vm39_vm0, %v20_v12 }
  0x2f   :  { %235 = vmatprep.subr.mxu0 %v271_v1 }
  0x32   :  { %236 = vmatpush3.xpose.msk.msra.mxu0 %vm39_vm0, %v19_v13 }
  0x33   :  { %237 = vmatprep.subr.mxu0 %v271_v1 }
  0x36   :  { %238 = vmatpush3.xpose.msk.msra.mxu0 %vm39_vm0, %v18_v14 }
  0x37   :  { %239 = vmatprep.subr.mxu0 %v271_v1 }
  0x3a   :  { %240 = vmatpush3.xpose.msk.msra.mxu0 %vm39_vm0, %v17_v15 }
  0x3b   :  { %241 = vmatprep.subr.mxu0 %v271_v1 }
  0x3e   :  { %242 = vmatpush3.xpose.msk.msra.mxu0 %vm39_vm0, %v16_v16 }
  0x41   :  { %244 = vmatmul.mubr.msk.f32.vlgmr.msra.gmra.mxu0 %vm39_vm0, %v15_v17 }
 0x101   :  { %v157_v19 = vpop.f32.mrf.mxu0 }
 0x102   :  { %v158_v20 = vadd.f32 %v176_v18, %v157_v19 }
 0x103   :  { %v245_v21 = vpop.f32.mrf.mxu0 }
 0x104   :  { %161 = vst [vmem:[#allocation2] sm:$0xff] %v158_v20 }
 0x105   :  { %260 = shalt.err (!%p257_p4)
}
 0x106   :  { %171 = dma.vmem_to_hbm [thread:$0]  %s169_s22, 128, %s371_s3, [#allocation3]  }
 0x107   :  { %269 = dma.done.wait [#allocation3], 128  }
 0x108   :  { %270 = vsyncadd [#allocation3], 4294967168 }
 0x109   :  { %175 = vsyncpa [#allocation3], 1 }

</bundles_post_ra>
